<compile_context>
chip_gen: v5e
topology: v5e:2x2
jax: 0.10.0
libtpu: 0.0.40
codegen_flags: <defaults>
</compile_context>

<pallas_src>
import functools

import jax
import jax.numpy as jnp
from jax import lax
from jax.experimental import pallas as pl
from jax.experimental.pallas import tpu as pltpu

EPS = 1e-6


def _static_int_pow(x, n):
    """x**n for a small static positive integer n via VPU multiplies."""
    r = x
    for _ in range(n - 1):
        r = r * x
    return r


def _pick_hw_tile(hw, max_thw):
    """Lane-tile width over HW: full HW if small, else a multiple-of-128 tile."""
    if hw <= max(max_thw, 128):
        return hw
    cap = max(128, (max_thw // 128) * 128)
    for t in range(cap, 127, -128):
        if hw % t == 0:
            return t          # exact tiling, no masking needed
    return cap                # ragged last tile, masked in-kernel


def _pick_c_tile(c, max_tc=512):
    """Sublane-tile over C: full C if small, else a multiple-of-8 divisor."""
    if c <= max_tc:
        return c
    t = (max_tc // 8) * 8
    while t >= 8:
        if c % t == 0:
            return t
        t -= 8
    return c                  # no multiple-of-8 divisor; fall back to full C


def _vmem_limit_bytes():
    """Per-generation scoped-VMEM budget with headroom below physical VMEM."""
    try:
        cap = pltpu.get_tpu_info().vmem_capacity_bytes
        return int(cap * 3 // 4)          # ~48 MiB on v7x, ~96 MiB on v5e/v6e
    except Exception:                     # pragma: no cover - older jax
        return 64 * 1024 * 1024


def _gem_max_pool_kernel(x_ref, out_ref, sum_sc, max_sc, *, p, hw, thw, ragged):
    h = pl.program_id(2)

    @pl.when(h == 0)
    def _init():
        sum_sc[...] = jnp.zeros_like(sum_sc)
        max_sc[...] = jnp.full_like(max_sc, -jnp.inf)

    x = x_ref[0].astype(jnp.float32)                       # (TC, THW): lanes = HW

    if ragged:
        # The clipped last tile holds garbage in lanes past the true HW extent.
        pos = h * thw + lax.broadcasted_iota(jnp.int32, x.shape, 1)
        valid = pos < hw
        x_max = jnp.where(valid, x, -jnp.inf)              # neutral for max
        xc = jnp.where(valid, jnp.maximum(x, EPS), 0.0)    # 0**p contributes 0
    else:
        x_max = x
        xc = jnp.maximum(x, EPS)

    ip = int(round(p))
    if abs(p - ip) < 1e-12 and 1 <= ip <= 8:
        xp = _static_int_pow(xc, ip)                       # p=3 -> 2 VPU muls
    else:
        xp = jnp.exp(p * jnp.log(xc))                      # generic fallback (EUP)

    # Full-tile elementwise partials (VPU only); one XLU reduce at finalize.
    sum_sc[...] += xp
    max_sc[...] = jnp.maximum(max_sc[...], x_max)

    @pl.when(h == pl.num_programs(2) - 1)
    def _finalize():
        s = jnp.sum(sum_sc[...], axis=-1, keepdims=True)   # (TC, 1)
        m = jnp.max(max_sc[...], axis=-1, keepdims=True)   # (TC, 1)
        gem_mean = s * (1.0 / hw)                          # true 1/(H*W)
        gem = jnp.exp(jnp.log(gem_mean) * (1.0 / p))       # gem_mean >= EPS**p > 0
        out_ref[0] = jnp.concatenate([gem, m], axis=-1).astype(out_ref.dtype)


def gem_max_pool(x_nchw, *, p, max_hw_tile=2048, max_c_tile=512):
    """GeM (clamp->^p->mean->^(1/p)) and max pooling over H*W -> (B, C, 2)."""
    B, C, H, W = x_nchw.shape
    HW = H * W
    x = x_nchw.reshape(B, C, HW)          # contiguous reshape; no HBM transpose

    thw = _pick_hw_tile(HW, max_hw_tile)
    tc = _pick_c_tile(C, max_c_tile)
    n_hw = pl.cdiv(HW, thw)
    n_c = C // tc
    ragged = (HW % thw) != 0

    kernel = functools.partial(_gem_max_pool_kernel, p=float(p), hw=HW,
                               thw=thw, ragged=ragged)

    return pl.pallas_call(
        kernel,
        out_shape=jax.ShapeDtypeStruct((B, C, 2), jnp.float32),
        grid_spec=pltpu.PrefetchScalarGridSpec(
            num_scalar_prefetch=0,
            grid=(B, n_c, n_hw),                            # HW = reduction, last
            in_specs=[pl.BlockSpec((1, tc, thw), lambda b, c, h: (b, c, h))],
            out_specs=pl.BlockSpec((1, tc, 2), lambda b, c, h: (b, c, 0)),
            scratch_shapes=[
                pltpu.VMEM((tc, thw), jnp.float32),         # partial clamp(x)^p sums
                pltpu.VMEM((tc, thw), jnp.float32),         # running max
            ],
        ),
        compiler_params=pltpu.CompilerParams(
            dimension_semantics=("parallel", "parallel", "arbitrary"),
            vmem_limit_bytes=_vmem_limit_bytes(),
        ),
        cost_estimate=pl.CostEstimate(
            flops=int(8 * B * C * HW),
            transcendentals=int(2 * B * C),
            bytes_accessed=int(x.size * x.dtype.itemsize + B * C * 2 * 4)),
    )(x)


def isupnet_head(x_nchw, params, *, max_hw_tile=2048, max_c_tile=512):
    """Inference head: GeM + max pooling (Pallas) then fc/classifier (XLA GEMMs)."""
    pooled = gem_max_pool(x_nchw, p=float(params["p"]),
                          max_hw_tile=max_hw_tile, max_c_tile=max_c_tile)
    gem, mx = pooled[:, :, 0], pooled[:, :, 1]              # (B, C) each

    # feat = cat([gem, mx], 1) @ fc_W^T + fc_b -- split halves to avoid the concat.
    # Full-batch (M = B) matmuls run on the MXU via XLA with no VMEM weight cost.
    feat = (gem @ params["fc_w_gem"].astype(jnp.float32)
            + mx @ params["fc_w_max"].astype(jnp.float32)
            + params["fc_b"])
    # dropout(0.4) is identity at inference.
    ys = feat @ params["cls_w"].astype(jnp.float32) + params["cls_b"]
    return ys


def init_params(key, feature, num_classes, *, weight_dtype=jnp.float32):
    k1, k2, k3, k4 = jax.random.split(key, 4)
    # nn.Linear(2*feature, feature): weight (feature, 2*feature), bias (feature,)
    fc_w = jax.random.normal(k1, (feature, 2 * feature), jnp.float32) * 0.05
    fc_b = jax.random.normal(k2, (feature,), jnp.float32) * 0.05
    # nn.Linear(feature, num_classes)
    cls_w = jax.random.normal(k3, (num_classes, feature), jnp.float32) * 0.05
    cls_b = jax.random.normal(k4, (num_classes,), jnp.float32) * 0.05
    fc_w_t = fc_w.T                                         # (2F, F): x @ W layout
    return {
        "p": 3.0,                                           # GeM(p=3), static at inference
        "fc_w_gem": fc_w_t[:feature, :].astype(weight_dtype),   # GeM half
        "fc_w_max": fc_w_t[feature:, :].astype(weight_dtype),   # max half
        "fc_b": fc_b,
        "cls_w": cls_w.T.astype(weight_dtype),              # (F, num_classes)
        "cls_b": cls_b,
    }


def reference_head(x_nchw, params):
    p = float(params["p"])
    xf = x_nchw.astype(jnp.float32)
    xc = jnp.clip(xf, EPS, None)
    gem = jnp.mean(xc ** p, axis=(2, 3)) ** (1.0 / p)       # (B, C)
    mx = jnp.max(xf, axis=(2, 3))                           # (B, C)
    feat = jnp.concatenate([gem, mx], axis=1)               # (B, 2C)
    fc_w = jnp.concatenate([params["fc_w_gem"], params["fc_w_max"]],
                           axis=0).astype(jnp.float32)
    feat = feat @ fc_w + params["fc_b"]
    return feat @ params["cls_w"].astype(jnp.float32) + params["cls_b"]


if __name__ == "__main__":
    num_classes = 6            # ISUP grades 0..5
    C = 32                     # toy backbone feature dim (2048 for resnext50)

    key = jax.random.PRNGKey(0)
    kx1, kx2, kp = jax.random.split(key, 3)
    params = init_params(kp, feature=C, num_classes=num_classes)

    # Case 1: HW divisible by the lane tile -> exercises the multi-step HW
    # reduction (tiny max_hw_tile; real maps use the much larger default).
    x1 = jax.random.uniform(kx1, (2, C, 16, 16), jnp.float32, minval=-1.0, maxval=2.0)
    y1 = jax.block_until_ready(isupnet_head(x1, params, max_hw_tile=128))
    r1 = reference_head(x1, params)
    assert y1.shape == (2, num_classes)
    assert jnp.allclose(y1, r1, rtol=2e-2, atol=1e-3), (y1, r1)

    # Case 2: ragged HW (12*12 = 144 vs 128-wide tiles) -> exercises the
    # in-kernel masking of the clipped last tile (no giant-tile fallback).
    x2 = jax.random.uniform(kx2, (2, C, 12, 12), jnp.float32, minval=-1.0, maxval=2.0)
    y2 = jax.block_until_ready(isupnet_head(x2, params, max_hw_tile=128))
    r2 = reference_head(x2, params)
    assert jnp.allclose(y2, r2, rtol=2e-2, atol=1e-3), (y2, r2)

    # Case 3: bf16-streamed feature map (halves the dominant HBM read).
    y3 = jax.block_until_ready(
        isupnet_head(x1.astype(jnp.bfloat16), params, max_hw_tile=128))
    r3 = reference_head(x1.astype(jnp.bfloat16), params)
    assert jnp.allclose(y3, r3, rtol=5e-2, atol=5e-3), (y3, r3)

    print("KERNEL_OK")
</pallas_src>

<mosaic_0001>
module attributes {stable_mosaic.version = 11 : i64} {
  func.func @_gem_max_pool_kernel(%arg0: i32, %arg1: i32, %arg2: i32, %arg3: memref<1x32x128xf32, #tpu.memory_space<vmem>>, %arg4: memref<1x32x2xf32, #tpu.memory_space<vmem>>, %arg5: memref<32x128xf32, #tpu.memory_space<vmem>>, %arg6: memref<32x128xf32, #tpu.memory_space<vmem>>) attributes {dimension_semantics = [#tpu.dimension_semantics<parallel>, #tpu.dimension_semantics<parallel>, #tpu.dimension_semantics<arbitrary>], iteration_bounds = array<i64: 2, 1, 2>, scalar_prefetch = 0 : i64, scratch_operands = 2 : i64, tpu.core_type = #tpu.core_type<tc>, window_params = [{transform_indices = @transform_0, window_bounds = array<i64: 1, 32, 128>}, {transform_indices = @transform_1, window_bounds = array<i64: 1, 32, 2>}]} {
    %c0_i32 = arith.constant 0 : i32
    %0 = arith.cmpi eq, %arg2, %c0_i32 : i32
    %1 = arith.extui %0 : i1 to i32
    %c0_i32_0 = arith.constant 0 : i32
    %2 = arith.cmpi ne, %1, %c0_i32_0 : i32
    scf.if %2 {
      %cst_12 = arith.constant 0.000000e+00 : f32
      %18 = vector.broadcast %cst_12 : f32 to vector<32x128xf32>
      %c0_13 = arith.constant 0 : index
      %c0_14 = arith.constant 0 : index
      %19 = vector.load %arg5[%c0_13, %c0_14] : memref<32x128xf32, #tpu.memory_space<vmem>>, vector<32x128xf32>
      tpu.vector_store %arg5[%c0_13, %c0_14], %18 {strides = array<i32>} : memref<32x128xf32, #tpu.memory_space<vmem>>, vector<32x128xf32>,
      %cst_15 = arith.constant 0xFF800000 : f32
      %20 = vector.broadcast %cst_15 : f32 to vector<32x128xf32>
      %c0_16 = arith.constant 0 : index
      %c0_17 = arith.constant 0 : index
      %21 = vector.load %arg6[%c0_16, %c0_17] : memref<32x128xf32, #tpu.memory_space<vmem>>, vector<32x128xf32>
      tpu.vector_store %arg6[%c0_16, %c0_17], %20 {strides = array<i32>} : memref<32x128xf32, #tpu.memory_space<vmem>>, vector<32x128xf32>,
    } else {
    }
    %c0 = arith.constant 0 : index
    %c0_1 = arith.constant 0 : index
    %c0_2 = arith.constant 0 : index
    %3 = vector.load %arg3[%c0, %c0_1, %c0_2] : memref<1x32x128xf32, #tpu.memory_space<vmem>>, vector<1x32x128xf32>
    %4 = vector.shape_cast %3 : vector<1x32x128xf32> to vector<32x128xf32>
    %cst = arith.constant 9.99999997E-7 : f32
    %5 = vector.broadcast %cst : f32 to vector<32x128xf32>
    %6 = arith.maximumf %4, %5 : vector<32x128xf32>
    %7 = arith.mulf %6, %6 : vector<32x128xf32>
    %8 = arith.mulf %7, %6 : vector<32x128xf32>
    %c0_3 = arith.constant 0 : index
    %c0_4 = arith.constant 0 : index
    %9 = vector.load %arg5[%c0_3, %c0_4] : memref<32x128xf32, #tpu.memory_space<vmem>>, vector<32x128xf32>
    %10 = arith.addf %9, %8 : vector<32x128xf32>
    %c0_5 = arith.constant 0 : index
    %c0_6 = arith.constant 0 : index
    %11 = vector.load %arg5[%c0_5, %c0_6] : memref<32x128xf32, #tpu.memory_space<vmem>>, vector<32x128xf32>
    tpu.vector_store %arg5[%c0_5, %c0_6], %10 {strides = array<i32>} : memref<32x128xf32, #tpu.memory_space<vmem>>, vector<32x128xf32>,
    %c0_7 = arith.constant 0 : index
    %c0_8 = arith.constant 0 : index
    %12 = vector.load %arg6[%c0_7, %c0_8] : memref<32x128xf32, #tpu.memory_space<vmem>>, vector<32x128xf32>
    %13 = arith.maximumf %12, %4 : vector<32x128xf32>
    %c0_9 = arith.constant 0 : index
    %c0_10 = arith.constant 0 : index
    %14 = vector.load %arg6[%c0_9, %c0_10] : memref<32x128xf32, #tpu.memory_space<vmem>>, vector<32x128xf32>
    tpu.vector_store %arg6[%c0_9, %c0_10], %13 {strides = array<i32>} : memref<32x128xf32, #tpu.memory_space<vmem>>, vector<32x128xf32>,
    %c1_i32 = arith.constant 1 : i32
    %15 = arith.cmpi eq, %arg2, %c1_i32 : i32
    %16 = arith.extui %15 : i1 to i32
    %c0_i32_11 = arith.constant 0 : i32
    %17 = arith.cmpi ne, %16, %c0_i32_11 : i32
    scf.if %17 {
      %c0_12 = arith.constant 0 : index
      %c0_13 = arith.constant 0 : index
      %18 = vector.load %arg5[%c0_12, %c0_13] : memref<32x128xf32, #tpu.memory_space<vmem>>, vector<32x128xf32>
      %cst_14 = arith.constant dense<0.000000e+00> : vector<32xf32>
      %19 = vector.multi_reduction <add>, %18, %cst_14 [1] : vector<32x128xf32> to vector<32xf32>
      %20 = vector.shape_cast %19 : vector<32xf32> to vector<32x1xf32>
      %c0_15 = arith.constant 0 : index
      %c0_16 = arith.constant 0 : index
      %21 = vector.load %arg6[%c0_15, %c0_16] : memref<32x128xf32, #tpu.memory_space<vmem>>, vector<32x128xf32>
      %cst_17 = arith.constant dense<0xFF800000> : vector<32xf32>
      %22 = vector.multi_reduction <maximumf>, %21, %cst_17 [1] : vector<32x128xf32> to vector<32xf32>
      %23 = vector.shape_cast %22 : vector<32xf32> to vector<32x1xf32>
      %cst_18 = arith.constant 3.906250e-03 : f32
      %24 = vector.broadcast %cst_18 : f32 to vector<32x1xf32>
      %25 = arith.mulf %20, %24 : vector<32x1xf32>
      %26 = math.log %25 : vector<32x1xf32>
      %cst_19 = arith.constant 0.333333343 : f32
      %27 = vector.broadcast %cst_19 : f32 to vector<32x1xf32>
      %28 = arith.mulf %26, %27 : vector<32x1xf32>
      %29 = math.exp %28 : vector<32x1xf32>
      %30 = tpu.concatenate %29, %23 in 1 : vector<32x1xf32>, vector<32x1xf32> -> vector<32x2xf32>
      %c0_20 = arith.constant 0 : index
      %c0_21 = arith.constant 0 : index
      %c0_22 = arith.constant 0 : index
      %31 = vector.load %arg4[%c0_20, %c0_21, %c0_22] : memref<1x32x2xf32, #tpu.memory_space<vmem>>, vector<1x32x2xf32>
      %32 = vector.shape_cast %31 : vector<1x32x2xf32> to vector<32x2xf32>
      %33 = vector.shape_cast %30 : vector<32x2xf32> to vector<1x32x2xf32>
      tpu.vector_store %arg4[%c0_20, %c0_21, %c0_22], %33 {strides = array<i32>} : memref<1x32x2xf32, #tpu.memory_space<vmem>>, vector<1x32x2xf32>,
    } else {
    }
    return
  }
  func.func @transform_0(%arg0: i32, %arg1: i32, %arg2: i32) -> (i32, i32, i32) {
    %c0_i32 = arith.constant 0 : i32
    return %arg0, %arg1, %arg2 : i32, i32, i32
  }
  func.func @transform_1(%arg0: i32, %arg1: i32, %arg2: i32) -> (i32, i32, i32) {
    %c0_i32 = arith.constant 0 : i32
    %c0_i32_0 = arith.constant 0 : i32
    return %arg0, %arg1, %c0_i32 : i32, i32, i32
  }
}

</mosaic_0001>

<bundles_post_ra>
// kernel: tpu_custom_call.1
= control target key start
LH: loop header
LB: loop body
LE: loop exit
PB: predicated region body
PF: predicated region fallthrough
CT: control target
= control target key end

     0   :  { %6 = vsyncpa [#allocation5], 0  ;;  %s744_s0 = inlined_call_operand.hbm [shape: f32[2,32,256], index: 0, kind: input, shape index: {}]   ;;  %s745_s1 = inlined_call_operand.vmem [shape: f32[2,32,2], index: 1, kind: output, shape index: {}]  }
   0x1   :  { %8 = vsyncpa [#allocation5 + $0x1], 0  ;;  %s615_s6 = smov 0   ;;  %s617_s7 = smov 0  }
   0x2   :  { %s619_s8 = smov 0   ;;  %s621_s9 = smov 0  }
   0x3   :  { %s623_s10 = smov 0   ;;  %s625_s11 = smov 0  }
   0x4   :  { %s627_s12 = smov 0   ;;  %s629_s13 = smov 0  }
   0x5 LB: > { %s394_s14 = sadd.s32 4294967295, %s598_s13   ;;  %s26_s15 = sadd.s32 1, %s590_s11  ;;  %s598_s13 = sphi %s629_s13, %s14_s13   ;;  %s594_s12 = sphi %s627_s12, %s754_s12   ;;  %s590_s11 = sphi %s625_s11, %s753_s11   ;;  %s586_s10 = sphi %s623_s10, %s752_s10   ;;  %s582_s9 = sphi %s621_s9, %s751_s9   ;;  %s578_s8 = sphi %s619_s8, %s750_s8   ;;  %s574_s7 = sphi %s617_s7, %s749_s7   ;;  %s570_s6 = sphi %s615_s6, %s748_s6  }
   0x6   : > { %p27_p0 = scmp.ge.s32.totalorder %s26_s15, 2  ;;  %s33_s16 = sadd.s32 1, %s594_s12 }
   0x7   : > { %s44_s17 = sadd.s32 1, %s578_s8  ;;  %p51_p1 = scmp.ne.s32.totalorder %s578_s8, %s574_s7 }
   0x8   : > { %s756_s15 = smov (%p27_p0, %s26_s15), 0  ;;  %s758_s16 = smov (!%p27_p0, %s33_s16), %s594_s12 }
   0x9   : > { %s40_s18 = ssub.s32 %s590_s11, %s756_s15  ;;  %p52_p2 = scmp.eq.s32.totalorder %s598_s13, 0 }
   0xa   : > { %p35_p3 = scmp.ge.s32.totalorder %s758_s16, 2  ;;  %p57_p4 = scmp.ne.s32.totalorder %s574_s7, %s570_s6 }
   0xb   : > { %p666_p5 = por %p52_p2, %p51_p1  ;;  %p58_p6 = scmp.eq.s32.totalorder %s394_s14, 0 }
   0xc   : > { %s760_s16 = smov (%p35_p3, %s758_s16), 0  ;;  %p416_p8 = scmp.lt.s32.totalorder %s598_s13, 4 }
   0xd   : > { %p672_p7 = por %p58_p6, %p57_p4  ;;  %s37_s21 = ssub.s32 %s594_s12, %s760_s16 }
   0xe   : > { %s41_s22 = sor.u32 %s40_s18, %s37_s21  ;;  %s109_s23 = sand.u32 1, %s578_s8  }
   0xf   : > { %p42_p9 = scmp.eq.s32.totalorder %s41_s22, 0  ;;  %s398_s24 = sshll.u32 %s109_s23, 5 }
  0x10   : > { %s399_s25 = sshll.u32 %s594_s12, 3  ;;  %s113_s29 = scalar_lea.vmem [#allocation4], %s398_s24 }
  0x11   : > { %s682_s26 = scalar_select %p42_p9, %s578_s8, %s44_s17  }
  0x12   : > { %s120_s27 = sadd.s32 %s590_s11, %s399_s25  ;;  %s125_s30 = sshll.u32 %s113_s29, 4  ;;  %s126_s30 = int_to_ptr.vmem [resolvable:$true] %s125_s30 }
  0x13   : > { %s400_s28 = sshll.u32 %s120_s27, 3  ;;  %p413_p10 = pnand %p416_p8, %p666_p5 }
  0x14   : > { %s122_s4 = scalar_lea.hbm %s744_s0, %s400_s28  ;;  %p401_p11 = scmp.ge.s32.totalorder %s598_s13, 1 }
  0x15   : > { %s123_s5 = sshll.u32 %s122_s4, 4  ;;  %s110_s6 = scalar_lea.sflag [#allocation5], %s109_s23  ;;  %s124_s5 = int_to_ptr.hbm [resolvable:$true] %s123_s5 }
  0x16   : > { %s600_s14 = smov 256   ;;  %s601_s17 = smov 128  }
  0x17   : > { %s602_s18 = smov 8   ;;  %p133_p12 = scmp.lt.s32.totalorder %s598_s13, 5 }
  0x18   : > { %415 = dma.hbm_to_vmem [thread:$0]  (!%p413_p10), %s124_s5, 512, %s126_s30, %s110_s6, %s600_s14, %s601_s17, %s602_s18  }
  0x19   : > { %p134_p13 = pnand %p401_p11, %p133_p12 }
  0x1a   : > { %s139_s21 = sand.u32 (!%p134_p13), 1, %s574_s7  }
  0x1b   : > { %137 = sbr.rel (%p134_p13) target bundleno = 217 (0xd9), region = 24  ;;  %s402_s22 = sshll.u32 (!%p134_p13), %s139_s21, 5 }
  0x1c   : > { %s140_s24 = scalar_lea.sflag (!%p134_p13), [#allocation5], %s139_s21  ;;  %s143_s25 = scalar_lea.vmem (!%p134_p13), [#allocation4], %s402_s22 }
  0x20   : > { %565 = dma.done.wait (%p672_p7), %s140_s24, 512  }
  0x21   : > { %567 = vsyncadd (%p672_p7), %s140_s24, 4294966784  ;;  %p169_p0 = scmp.lt.s32.totalorder %s586_s10, 1  ;;  %p405_p1 = scmp.ne.s32.totalorder %s582_s9, 0 }
  0x23   : > { %s762_s10 = smov (!%p169_p0, %s586_s10), 1  ;;  %181 = sbr.rel (%p405_p1) target bundleno = 49 (0x31), region = 32 }
  0x24   : > { %s409_s19 = sshll.u32 %s762_s10, 5 }
  0x25   : > { %s704_s28 = scalar_lea.vmem %s745_s1, %s409_s19 }
  0x28   : > { %v603_v0 = vmov 0.0   ;;  %v604_v1 = vmov -inf  }
  0x29   : > { %182 = vst [vmem:[#allocation2 + $0x10] sm:$0xff] %v603_v0 }
  0x2a   : > { %183 = vst [vmem:[#allocation2] sm:$0xff] %v603_v0 }
  0x2b   : > { %184 = vst [vmem:[#allocation2 + $0x18] sm:$0xff] %v603_v0 }
  0x2c   : > { %185 = vst [vmem:[#allocation2 + $0x8] sm:$0xff] %v603_v0 }
  0x2d   : > { %186 = vst [vmem:[#allocation3] sm:$0xff] %v604_v1 }
  0x2e   : > { %187 = vst [vmem:[#allocation3 + $0x18] sm:$0xff] %v604_v1 }
  0x2f   : > { %188 = vst [vmem:[#allocation3 + $0x8] sm:$0xff] %v604_v1 }
  0x30   : > { %189 = vst [vmem:[#allocation3 + $0x10] sm:$0xff] %v604_v1 }
  0x31 PF: > { %v190_v2 = vld [vmem:[%s143_s25] sm:$0xff]  ;;  %v191_v3 = vld [vmem:[%s143_s25 + $0x8] sm:$0xff]  ;;  %v192_v6 = vld [vmem:[%s143_s25 + $0x10] sm:$0xff]  ;;  %p406_p2 = scmp.ne.s32.totalorder %s582_s9, 1 }
  0x32   : > { %v194_v4 = vmax.f32 %v190_v2, 1e-06  ;;  %v195_v5 = vmax.f32 %v191_v3, 1e-06  ;;  %v196_v7 = vmax.f32 %v192_v6, 1e-06 }
  0x33   : > { %v193_v8 = vld [vmem:[%s143_s25 + $0x18] sm:$0xff]  ;;  %v206_v15 = vld [vmem:[#allocation2 + $0x10] sm:$0xff]  ;;  %v207_v16 = vld [vmem:[#allocation2] sm:$0xff] }
  0x34   : > { %v198_v9 = vmul.f32 %v194_v4, %v194_v4  ;;  %v199_v10 = vmul.f32 %v195_v5, %v195_v5  ;;  %v197_v11 = vmax.f32 %v193_v8, 1e-06  ;;  %v218_v12 = vld [vmem:[#allocation3] sm:$0xff]  ;;  %v200_v17 = vmul.f32 %v196_v7, %v196_v7  ;;  %v208_v23 = vld [vmem:[#allocation2 + $0x18] sm:$0xff]  ;;  %v209_v26 = vld [vmem:[#allocation2 + $0x8] sm:$0xff] }
  0x35   : > { %v219_v13 = vld [vmem:[#allocation3 + $0x18] sm:$0xff]  ;;  %v222_v18 = vmax.f32 %v218_v12, %v190_v2 }
  0x36   : > { %v220_v14 = vld [vmem:[#allocation3 + $0x8] sm:$0xff]  ;;  %v223_v19 = vmax.f32 %v219_v13, %v191_v3  ;;  %v202_v21 = vmul.f32 %v198_v9, %v194_v4  ;;  %v203_v22 = vmul.f32 %v199_v10, %v195_v5  ;;  %v201_v24 = vmul.f32 %v197_v11, %v197_v11 }
  0x37   : > { %v224_v20 = vmax.f32 %v220_v14, %v192_v6  ;;  %v204_v25 = vmul.f32 %v200_v17, %v196_v7  ;;  %226 = vst [vmem:[#allocation3] sm:$0xff] %v222_v18  ;;  %v221_v27 = vld [vmem:[#allocation3 + $0x10] sm:$0xff] }
  0x38   : > { %v210_v28 = vadd.f32 %v206_v15, %v202_v21  ;;  %v211_v29 = vadd.f32 %v207_v16, %v203_v22  ;;  %v205_v30 = vmul.f32 %v201_v24, %v197_v11  ;;  %227 = vst [vmem:[#allocation3 + $0x18] sm:$0xff] %v223_v19  ;;  %v225_v33 = vmax.f32 %v221_v27, %v193_v8 }
  0x39   : > { %v212_v31 = vadd.f32 %v208_v23, %v204_v25  ;;  %228 = vst [vmem:[#allocation3 + $0x8] sm:$0xff] %v224_v20 }
  0x3a   : > { %214 = vst [vmem:[#allocation2 + $0x10] sm:$0xff] %v210_v28  ;;  %v213_v32 = vadd.f32 %v209_v26, %v205_v30  ;;  %233 = sbr.rel (%p406_p2) target bundleno = 217 (0xd9), region = 36 }
  0x3b   : > { %215 = vst [vmem:[#allocation2] sm:$0xff] %v211_v29 }
  0x3c   : > { %216 = vst [vmem:[#allocation2 + $0x18] sm:$0xff] %v212_v31 }
  0x3d   : > { %217 = vst [vmem:[#allocation2 + $0x8] sm:$0xff] %v213_v32 }
  0x3e   : > { %229 = vst [vmem:[#allocation3 + $0x10] sm:$0xff] %v225_v33 }
  0x3f   : > { %v246_v36 = vld [vmem:[#allocation3] sm:$0xff]  ;;  %v247_v39 = vld [vmem:[#allocation3 + $0x18] sm:$0xff]  ;;  %vm282_vm0 = vcmask 7168   ;;  %vm287_vm1 = vcmask 15360  }
  0x40   : > { %250 = vmax.xlane.f32.xlu2 %v246_v36  ;;  %v248_v40 = vld [vmem:[#allocation3 + $0x8] sm:$0xff] }
  0x41   : > { %v234_v35 = vld [vmem:[#allocation2 + $0x10] sm:$0xff] }
  0x42   : > { %238 = vadd.xlane.f32.xlu0 %v234_v35  ;;  %v235_v38 = vld [vmem:[#allocation2] sm:$0xff] }
  0x43   : > { %v236_v34 = vld [vmem:[#allocation2 + $0x18] sm:$0xff] }
  0x44   : > { %242 = vadd.xlane.f32.xlu1 %v236_v34  ;;  %v237_v37 = vld [vmem:[#allocation2 + $0x8] sm:$0xff] }
  0x45   : > { %v249_v41 = vld [vmem:[#allocation3 + $0x10] sm:$0xff] }
  0x48   : > { %252 = vmax.xlane.f32.xlu2 %v247_v39 }
  0x4a   : > { %240 = vadd.xlane.f32.xlu0 %v235_v38 }
  0x4c   : > { %244 = vadd.xlane.f32.xlu1 %v237_v37 }
  0x52   : > { %254 = vmax.xlane.f32.xlu0 %v248_v40 }
  0x54   : > { %256 = vmax.xlane.f32.xlu1 %v249_v41 }
  0xb3   : > { %v251_v62 = vpop.xlane.xlu2 %250 }
  0xb5   : > { %v239_v43 = vpop.xlane.xlu0 %238 }
  0xb6   : > { %v258_v45 = vmul.f32 0.00390625, %v239_v43 }
  0xb7   : > { %v243_v42 = vpop.xlane.xlu1 %242 }
  0xb8   : > { %v260_v44 = vmul.f32 0.00390625, %v243_v42 }
  0xba   : > { %486 = vlog2.f32 %v260_v44 }
  0xbb   : > { %488 = vlog2.f32 %v258_v45  ;;  %v253_v9 = vpop.xlane.xlu2 %252 }
  0xbd   : > { %v241_v47 = vpop.xlane.xlu0 %240 }
  0xbe   : > { %v259_v50 = vmul.f32 0.00390625, %v241_v47 }
  0xbf   : > { %v245_v46 = vpop.xlane.xlu1 %244 }
  0xc0   : > { %v487_v48 = vpop.eup %486  ;;  %v261_v49 = vmul.f32 0.00390625, %v245_v46 }
  0xc1   : > { %v489_v51 = vpop.eup %488  ;;  %v267_v52 = vmul.f32 0.6931472, %v487_v48 }
  0xc2   : > { %v263_v53 = vmul.f32 0.6931472, %v489_v51  ;;  %490 = vlog2.f32 %v261_v49 }
  0xc3   : > { %v272_v54 = vmul.f32 0.33333334, %v267_v52  ;;  %492 = vlog2.f32 %v259_v50 }
  0xc4   : > { %v270_v55 = vmul.f32 0.33333334, %v263_v53 }
  0xc5   : > { %v278_v56 = vmul.f32 1.442695, %v272_v54  ;;  %v255_v0 = vpop.xlane.xlu0 %254 }
  0xc6   : > { %v274_v57 = vmul.f32 1.442695, %v270_v55 }
  0xc7   : > { %494 = vpow2.f32 %v278_v56  ;;  %v257_v8 = vpop.xlane.xlu1 %256 }
  0xc8   : > { %v491_v58 = vpop.eup %490  ;;  %496 = vpow2.f32 %v274_v57 }
  0xc9   : > { %v493_v59 = vpop.eup %492  ;;  %v269_v60 = vmul.f32 0.6931472, %v491_v58 }
  0xca   : > { %v265_v61 = vmul.f32 0.6931472, %v493_v59 }
  0xcb   : > { %v273_v63 = vmul.f32 0.33333334, %v269_v60 }
  0xcc   : > { %v271_v1 = vmul.f32 0.33333334, %v265_v61 }
  0xcd   : > { %v495_v2 = vpop.eup %494  ;;  %v280_v3 = vmul.f32 1.442695, %v273_v63 }
  0xce   : > { %v497_v4 = vpop.eup %496  ;;  %v276_v5 = vmul.f32 1.442695, %v271_v1  ;;  %v285_v6 = vsel %vm282_vm0, %v495_v2, %v255_v0 }
  0xcf   : > { %498 = vpow2.f32 %v280_v3  ;;  %v283_v7 = vsel %vm282_vm0, %v497_v4, %v251_v62  ;;  %290 = vst.msk [vmem:[%s704_s28 + $0x10] sm:$0xff] %vm287_vm1, %v285_v6 }
  0xd0   : > { %500 = vpow2.f32 %v276_v5  ;;  %288 = vst.msk [vmem:[%s704_s28] sm:$0xff] %vm287_vm1, %v283_v7 }
  0xd5   : > { %v499_v10 = vpop.eup %498 }
  0xd6   : > { %v501_v11 = vpop.eup %500  ;;  %v286_v12 = vsel %vm282_vm0, %v499_v10, %v257_v8 }
  0xd7   : > { %v284_v13 = vsel %vm282_vm0, %v501_v11, %v253_v9  ;;  %291 = vst.msk [vmem:[%s704_s28 + $0x18] sm:$0xff] %vm287_vm1, %v286_v12 }
  0xd8   : > { %289 = vst.msk [vmem:[%s704_s28 + $0x8] sm:$0xff] %vm287_vm1, %v284_v13 }
  0xd9 PF: > { %s14_s13 = sadd.s32 1, %s598_s13   ;;  %s748_s6 = smov %s574_s7 }
  0xda   : > { %p11_p3 = scmp.ge.s32.totalorder %s14_s13, 6   ;;  %s749_s7 = smov %s578_s8 }
  0xdb   : > { %s750_s8 = smov %s682_s26  ;;  %s751_s9 = smov %s590_s11 }
  0xdc   : > { %s752_s10 = smov %s594_s12  ;;  %s753_s11 = smov %s756_s15 }
  0xdd   : > { %s754_s12 = smov %s760_s16  ;;  %13 = sbr.rel (!%p11_p3) target bundleno = 5 (0x5), region = 72 }
  0xe2   :  { %322 = vsyncpa [#allocation5], 1 }
  0xe3   :  { %324 = vsyncpa [#allocation5 + $0x1], 1 }

</bundles_post_ra>
